<compile_context>
chip_gen: v7x
topology: tpu7x:2x2x1
jax: 0.10.0
libtpu: 0.0.40
codegen_flags: <defaults>
</compile_context>

<pallas_src>
import jax
import jax.numpy as jnp
from jax.experimental import pallas as pl
from jax.experimental.pallas import tpu as pltpu


def mlp_kernel(x_ref, w1_ref, b1_ref, w2_ref, b2_ref,
               w3_ref, b3_ref, w4_ref, b4_ref, o_ref):
    cdt = w1_ref.dtype  # MXU input dtype (f32 here; bf16 if params are bf16)

    # hidden_layer1: (TB, E) @ (E, H) + (1, H)
    h1 = jnp.dot(x_ref[...].astype(cdt), w1_ref[...],
                 preferred_element_type=jnp.float32) + b1_ref[...]
    # hidden_layer2: (TB, H) @ (H, 2H) + (1, 2H)
    h2 = jnp.dot(h1.astype(cdt), w2_ref[...],
                 preferred_element_type=jnp.float32) + b2_ref[...]
    # dropout_layer (eval mode) -> identity
    # hidden_layer3: (TB, 2H) @ (2H, H) + (1, H)
    h3 = jnp.dot(h2.astype(cdt), w3_ref[...],
                 preferred_element_type=jnp.float32) + b3_ref[...]
    # dropout_layer (eval mode) -> identity

    # output_layer (out_features == 1): VPU broadcast-multiply + lane reduce
    # instead of an N=1 MXU matmul.  w4 is stored as the PyTorch (1, H) row.
    prod = h3 * w4_ref[...].astype(jnp.float32)                 # (TB, H)
    logits = jnp.sum(prod, axis=-1, keepdims=True)              # (TB, 1)
    logits = logits + b4_ref[...].astype(jnp.float32)           # (TB, 1)

    # Lane-dense store: write the batch along lanes as a (1, TB) row.
    o_ref[...] = jnp.transpose(logits).astype(o_ref.dtype)


def _pick_batch_tile(B, cap_rows=2048):
    """Largest multiple of 128 that divides B, leaves >= 2 grid steps, and is
    capped so tiles stay comfortably inside scoped VMEM (incl. v7x's smaller
    budget). Falls back to the whole batch (single full-extent block) when B
    is too small/odd to split on a 128 boundary."""
    best = None
    t = 128
    limit = min(B // 2, cap_rows)
    while t <= limit:
        if B % t == 0:
            best = t
        t += 128
    return best if best is not None else B


def mlp_classifier_forward(x, params, *, batch_tile=None):
    """x: (B, E). params: w1..w3 as (in, out), w4 as (1, H); biases (1, out).

    Returns logits of shape (B, 1) (matches PyTorch MLPClassifier.forward;
    no sigmoid is applied, same as the reference module)."""
    B, E = x.shape
    if batch_tile is None:
        batch_tile = _pick_batch_tile(B)
    assert B % batch_tile == 0

    w1, b1 = params["w1"], params["b1"]
    w2, b2 = params["w2"], params["b2"]
    w3, b3 = params["w3"], params["b3"]
    w4, b4 = params["w4"], params["b4"]

    grid = (B // batch_tile,)

    def full_spec(shape):
        # weights/biases are tiny -> whole array resident every grid step
        return pl.BlockSpec(shape, lambda i: tuple(0 for _ in shape))

    out_row = pl.pallas_call(
        mlp_kernel,
        # lane-dense output: batch along lanes
        out_shape=jax.ShapeDtypeStruct((1, B), x.dtype),
        grid_spec=pltpu.PrefetchScalarGridSpec(
            num_scalar_prefetch=0,
            grid=grid,
            in_specs=[
                pl.BlockSpec((batch_tile, E), lambda i: (i, 0)),  # x tile
                full_spec(w1.shape), full_spec(b1.shape),
                full_spec(w2.shape), full_spec(b2.shape),
                full_spec(w3.shape), full_spec(b3.shape),
                full_spec(w4.shape), full_spec(b4.shape),
            ],
            out_specs=pl.BlockSpec((1, batch_tile), lambda i: (0, i)),
        ),
        compiler_params=pltpu.CompilerParams(
            dimension_semantics=("parallel",)),
    )(x, w1, b1, w2, b2, w3, b3, w4, b4)

    # back to PyTorch's (B, 1) layout outside the kernel
    return out_row.reshape(B, 1)


def init_params(key, embedding_size, hidden_size, dtype=jnp.float32):
    """Deterministic init mimicking nn.Linear default (uniform +/- 1/sqrt(fan_in)).

    w1..w3 are stored as (in_features, out_features) = W^T relative to PyTorch.
    w4 (the out_features==1 layer) is stored in PyTorch layout (1, H) so the
    kernel can broadcast-multiply it as a row. Biases are (1, out_features).
    Use dtype=jnp.bfloat16 to halve weight/activation traffic at larger E/H.
    """
    params = {}
    # hidden_layer1 / hidden_layer2 / hidden_layer3: (in, out) storage
    dims = [
        (embedding_size, hidden_size),       # hidden_layer1
        (hidden_size, hidden_size * 2),      # hidden_layer2
        (hidden_size * 2, hidden_size),      # hidden_layer3
    ]
    for idx, (fan_in, fan_out) in enumerate(dims, start=1):
        key, kw, kb = jax.random.split(key, 3)
        bound = 1.0 / (fan_in ** 0.5)
        params[f"w{idx}"] = jax.random.uniform(
            kw, (fan_in, fan_out), dtype, minval=-bound, maxval=bound)
        params[f"b{idx}"] = jax.random.uniform(
            kb, (1, fan_out), dtype, minval=-bound, maxval=bound)
    # output_layer: weight row (1, H), bias (1, 1)
    key, kw, kb = jax.random.split(key, 3)
    bound = 1.0 / (hidden_size ** 0.5)
    params["w4"] = jax.random.uniform(
        kw, (1, hidden_size), dtype, minval=-bound, maxval=bound)
    params["b4"] = jax.random.uniform(
        kb, (1, 1), dtype, minval=-bound, maxval=bound)
    return params


def mlp_classifier_ref(x, params):
    """Pure-JAX reference for correctness checking."""
    h = x @ params["w1"] + params["b1"]
    h = h @ params["w2"] + params["b2"]
    h = h @ params["w3"] + params["b3"]
    return h @ params["w4"].T + params["b4"]


if __name__ == "__main__":
    embedding_size = 32
    hidden_size = 32
    dropout = 0.1  # eval-mode -> identity in forward
    batch = 256    # gives a 2-step "parallel" grid (batch_tile auto -> 128)

    key = jax.random.PRNGKey(0)
    key, kx = jax.random.split(key)
    x = jax.random.normal(kx, (batch, embedding_size), dtype=jnp.float32)
    params = init_params(key, embedding_size, hidden_size)

    out = mlp_classifier_forward(x, params)
    out = jax.block_until_ready(out)

    ref = mlp_classifier_ref(x, params)
    assert out.shape == (batch, 1)
    assert jnp.allclose(out, ref, atol=1e-4, rtol=1e-4), "mismatch vs reference"

    # Also exercise the small-batch / single-block path.
    x_small = jax.random.normal(key, (8, embedding_size), dtype=jnp.float32)
    out_small = jax.block_until_ready(mlp_classifier_forward(x_small, params))
    ref_small = mlp_classifier_ref(x_small, params)
    assert out_small.shape == (8, 1)
    assert jnp.allclose(out_small, ref_small, atol=1e-4, rtol=1e-4)

    # TODO(synk): training-mode dropout (pltpu.prng_seed + stateful_bernoulli)
    # not implemented; forward matches model.eval() semantics.
    print("KERNEL_OK")
</pallas_src>

<mosaic_0001>
module attributes {stable_mosaic.version = 11 : i64} {
  func.func @mlp_kernel(%arg0: i32, %arg1: memref<128x32xf32, #tpu.memory_space<vmem>>, %arg2: memref<32x32xf32, #tpu.memory_space<vmem>>, %arg3: memref<1x32xf32, #tpu.memory_space<vmem>>, %arg4: memref<32x64xf32, #tpu.memory_space<vmem>>, %arg5: memref<1x64xf32, #tpu.memory_space<vmem>>, %arg6: memref<64x32xf32, #tpu.memory_space<vmem>>, %arg7: memref<1x32xf32, #tpu.memory_space<vmem>>, %arg8: memref<1x32xf32, #tpu.memory_space<vmem>>, %arg9: memref<1x1xf32, #tpu.memory_space<vmem>>, %arg10: memref<1x128xf32, #tpu.memory_space<vmem>>) attributes {dimension_semantics = [#tpu.dimension_semantics<parallel>], iteration_bounds = array<i64: 2>, scalar_prefetch = 0 : i64, scratch_operands = 0 : i64, tpu.core_type = #tpu.core_type<tc>, window_params = [{transform_indices = @transform_0, window_bounds = array<i64: 128, 32>}, {pipeline_mode = #tpu.pipeline_mode<synchronous>, transform_indices = @transform_1, window_bounds = array<i64: 32, 32>}, {pipeline_mode = #tpu.pipeline_mode<synchronous>, transform_indices = @transform_2, window_bounds = array<i64: 1, 32>}, {pipeline_mode = #tpu.pipeline_mode<synchronous>, transform_indices = @transform_3, window_bounds = array<i64: 32, 64>}, {pipeline_mode = #tpu.pipeline_mode<synchronous>, transform_indices = @transform_4, window_bounds = array<i64: 1, 64>}, {pipeline_mode = #tpu.pipeline_mode<synchronous>, transform_indices = @transform_5, window_bounds = array<i64: 64, 32>}, {pipeline_mode = #tpu.pipeline_mode<synchronous>, transform_indices = @transform_6, window_bounds = array<i64: 1, 32>}, {pipeline_mode = #tpu.pipeline_mode<synchronous>, transform_indices = @transform_7, window_bounds = array<i64: 1, 32>}, {pipeline_mode = #tpu.pipeline_mode<synchronous>, transform_indices = @transform_8, window_bounds = array<i64: 1, 1>}, {transform_indices = @transform_9, window_bounds = array<i64: 1, 128>}]} {
    %c0 = arith.constant 0 : index
    %c0_0 = arith.constant 0 : index
    %0 = vector.load %arg1[%c0, %c0_0] : memref<128x32xf32, #tpu.memory_space<vmem>>, vector<128x32xf32>
    %c0_1 = arith.constant 0 : index
    %c0_2 = arith.constant 0 : index
    %1 = vector.load %arg2[%c0_1, %c0_2] : memref<32x32xf32, #tpu.memory_space<vmem>>, vector<32x32xf32>
    %cst = arith.constant dense<0.000000e+00> : vector<128x32xf32>
    %2 = tpu.matmul %0, %1, %cst {dimension_numbers = #tpu.dot_dimension_numbers<[1], [0], [0], [1], [0, 0, 1, 1], [], []>} : vector<128x32xf32>, vector<32x32xf32>, vector<128x32xf32> -> vector<128x32xf32>
    %c0_3 = arith.constant 0 : index
    %c0_4 = arith.constant 0 : index
    %3 = vector.load %arg3[%c0_3, %c0_4] : memref<1x32xf32, #tpu.memory_space<vmem>>, vector<1x32xf32>
    %4 = vector.broadcast %3 : vector<1x32xf32> to vector<128x32xf32>
    %5 = arith.addf %2, %4 : vector<128x32xf32>
    %c0_5 = arith.constant 0 : index
    %c0_6 = arith.constant 0 : index
    %6 = vector.load %arg4[%c0_5, %c0_6] : memref<32x64xf32, #tpu.memory_space<vmem>>, vector<32x64xf32>
    %cst_7 = arith.constant dense<0.000000e+00> : vector<128x64xf32>
    %7 = tpu.matmul %5, %6, %cst_7 {dimension_numbers = #tpu.dot_dimension_numbers<[1], [0], [0], [1], [0, 0, 1, 1], [], []>} : vector<128x32xf32>, vector<32x64xf32>, vector<128x64xf32> -> vector<128x64xf32>
    %c0_8 = arith.constant 0 : index
    %c0_9 = arith.constant 0 : index
    %8 = vector.load %arg5[%c0_8, %c0_9] : memref<1x64xf32, #tpu.memory_space<vmem>>, vector<1x64xf32>
    %9 = vector.broadcast %8 : vector<1x64xf32> to vector<128x64xf32>
    %10 = arith.addf %7, %9 : vector<128x64xf32>
    %c0_10 = arith.constant 0 : index
    %c0_11 = arith.constant 0 : index
    %11 = vector.load %arg6[%c0_10, %c0_11] : memref<64x32xf32, #tpu.memory_space<vmem>>, vector<64x32xf32>
    %cst_12 = arith.constant dense<0.000000e+00> : vector<128x32xf32>
    %12 = tpu.matmul %10, %11, %cst_12 {dimension_numbers = #tpu.dot_dimension_numbers<[1], [0], [0], [1], [0, 0, 1, 1], [], []>} : vector<128x64xf32>, vector<64x32xf32>, vector<128x32xf32> -> vector<128x32xf32>
    %c0_13 = arith.constant 0 : index
    %c0_14 = arith.constant 0 : index
    %13 = vector.load %arg7[%c0_13, %c0_14] : memref<1x32xf32, #tpu.memory_space<vmem>>, vector<1x32xf32>
    %14 = vector.broadcast %13 : vector<1x32xf32> to vector<128x32xf32>
    %15 = arith.addf %12, %14 : vector<128x32xf32>
    %c0_15 = arith.constant 0 : index
    %c0_16 = arith.constant 0 : index
    %16 = vector.load %arg8[%c0_15, %c0_16] : memref<1x32xf32, #tpu.memory_space<vmem>>, vector<1x32xf32>
    %17 = vector.broadcast %16 : vector<1x32xf32> to vector<128x32xf32>
    %18 = arith.mulf %15, %17 : vector<128x32xf32>
    %cst_17 = arith.constant dense<0.000000e+00> : vector<128xf32>
    %19 = vector.multi_reduction <add>, %18, %cst_17 [1] : vector<128x32xf32> to vector<128xf32>
    %20 = vector.shape_cast %19 : vector<128xf32> to vector<128x1xf32>
    %c0_18 = arith.constant 0 : index
    %c0_19 = arith.constant 0 : index
    %21 = vector.load %arg9[%c0_18, %c0_19] : memref<1x1xf32, #tpu.memory_space<vmem>>, vector<1x1xf32>
    %22 = vector.broadcast %21 : vector<1x1xf32> to vector<128x1xf32>
    %23 = arith.addf %20, %22 : vector<128x1xf32>
    %24 = tpu.transpose %23, [1, 0] : vector<128x1xf32> -> vector<1x128xf32>
    %c0_20 = arith.constant 0 : index
    %c0_21 = arith.constant 0 : index
    %25 = vector.load %arg10[%c0_20, %c0_21] : memref<1x128xf32, #tpu.memory_space<vmem>>, vector<1x128xf32>
    tpu.vector_store %arg10[%c0_20, %c0_21], %24 {strides = array<i32>} : memref<1x128xf32, #tpu.memory_space<vmem>>, vector<1x128xf32>,
    return
  }
  func.func @transform_0(%arg0: i32) -> (i32, i32) {
    %c0_i32 = arith.constant 0 : i32
    %c0_i32_0 = arith.constant 0 : i32
    return %arg0, %c0_i32 : i32, i32
  }
  func.func @transform_1(%arg0: i32) -> (i32, i32) {
    %c0_i32 = arith.constant 0 : i32
    %c0_i32_0 = arith.constant 0 : i32
    %c0_i32_1 = arith.constant 0 : i32
    return %c0_i32, %c0_i32_0 : i32, i32
  }
  func.func @transform_2(%arg0: i32) -> (i32, i32) {
    %c0_i32 = arith.constant 0 : i32
    %c0_i32_0 = arith.constant 0 : i32
    %c0_i32_1 = arith.constant 0 : i32
    return %c0_i32, %c0_i32_0 : i32, i32
  }
  func.func @transform_3(%arg0: i32) -> (i32, i32) {
    %c0_i32 = arith.constant 0 : i32
    %c0_i32_0 = arith.constant 0 : i32
    %c0_i32_1 = arith.constant 0 : i32
    return %c0_i32, %c0_i32_0 : i32, i32
  }
  func.func @transform_4(%arg0: i32) -> (i32, i32) {
    %c0_i32 = arith.constant 0 : i32
    %c0_i32_0 = arith.constant 0 : i32
    %c0_i32_1 = arith.constant 0 : i32
    return %c0_i32, %c0_i32_0 : i32, i32
  }
  func.func @transform_5(%arg0: i32) -> (i32, i32) {
    %c0_i32 = arith.constant 0 : i32
    %c0_i32_0 = arith.constant 0 : i32
    %c0_i32_1 = arith.constant 0 : i32
    return %c0_i32, %c0_i32_0 : i32, i32
  }
  func.func @transform_6(%arg0: i32) -> (i32, i32) {
    %c0_i32 = arith.constant 0 : i32
    %c0_i32_0 = arith.constant 0 : i32
    %c0_i32_1 = arith.constant 0 : i32
    return %c0_i32, %c0_i32_0 : i32, i32
  }
  func.func @transform_7(%arg0: i32) -> (i32, i32) {
    %c0_i32 = arith.constant 0 : i32
    %c0_i32_0 = arith.constant 0 : i32
    %c0_i32_1 = arith.constant 0 : i32
    return %c0_i32, %c0_i32_0 : i32, i32
  }
  func.func @transform_8(%arg0: i32) -> (i32, i32) {
    %c0_i32 = arith.constant 0 : i32
    %c0_i32_0 = arith.constant 0 : i32
    %c0_i32_1 = arith.constant 0 : i32
    return %c0_i32, %c0_i32_0 : i32, i32
  }
  func.func @transform_9(%arg0: i32) -> (i32, i32) {
    %c0_i32 = arith.constant 0 : i32
    %c0_i32_0 = arith.constant 0 : i32
    return %c0_i32, %arg0 : i32, i32
  }
}

</mosaic_0001>

<bundles_post_ra>
// kernel: tpu_custom_call.1
= control target key start
LH: loop header
LB: loop body
LE: loop exit
PB: predicated region body
PF: predicated region fallthrough
CT: control target
= control target key end

     0   :  { %s1863_s0 = inlined_call_operand.vmem [shape: f32[256,32], index: 0, kind: input, shape index: {}]   ;;  %s1864_s1 = inlined_call_operand.vmem [shape: f32[32,32], index: 1, kind: input, shape index: {}]   ;;  %s1865_s2 = inlined_call_operand.vmem [shape: f32[1,32], index: 2, kind: input, shape index: {}]   ;;  %s1866_s3 = inlined_call_operand.vmem [shape: f32[32,64], index: 3, kind: input, shape index: {}]   ;;  %s1867_s4 = inlined_call_operand.vmem [shape: f32[1,64], index: 4, kind: input, shape index: {}]   ;;  %s1868_s5 = inlined_call_operand.vmem [shape: f32[64,32], index: 5, kind: input, shape index: {}]   ;;  %s1869_s6 = inlined_call_operand.vmem [shape: f32[1,32], index: 6, kind: input, shape index: {}]   ;;  %s1870_s7 = inlined_call_operand.vmem [shape: f32[1,32], index: 7, kind: input, shape index: {}]   ;;  %s1871_s8 = inlined_call_operand.<no memory space> [shape: f32[1,1], index: 8, kind: input, shape index: {}]   ;;  %s1872_s9 = inlined_call_operand.hbm [shape: f32[1,256], index: 9, kind: output, shape index: {}]  }
   0x1   :  { %v14_v0 = vstv %s1871_s8 }
   0x2   :  { %15 = vst [vmem:[#allocation2] sm:$0x1] %v14_v0 }
   0x3   :  { %16 = vsyncpa [#allocation4], 0 }
   0x4   :  { %18 = vsyncpa [#allocation4 + $0x1], 0  ;;  %s1586_s11 = smov 0   ;;  %s1588_s12 = smov 0  }
   0x5   :  { %s1590_s13 = smov 0   ;;  %s1592_s14 = smov 0  }
   0x6 LB: > { %s1162_s8 = sadd.s32 4294967295, %s1530_s14   ;;  %s1163_s15 = sadd.s32 4294967294, %s1530_s14   ;;  %s1530_s14 = sphi %s1592_s14, %s1878_s14   ;;  %s1526_s13 = sphi %s1590_s13, %s1877_s13   ;;  %s1522_s12 = sphi %s1588_s12, %s1876_s12   ;;  %s1518_s11 = sphi %s1586_s11, %s1875_s11  }
   0x7   : > { %s1609_s16 = sadd.s32 1, %s1530_s14   ;;  %s225_s17 = sadd.s32 1, %s1526_s13 }
   0x8   : > { %s222_s18 = ssub.s32 %s1530_s14, %s1609_s16  ;;  %p235_p0 = scmp.ne.s32.totalorder %s1526_s13, %s1522_s12 }
   0x9   : > { %p223_p1 = scmp.eq.s32.totalorder %s222_s18, 0  ;;  %p236_p2 = scmp.eq.s32.totalorder %s1162_s8, 1 }
   0xa   : > { %p241_p3 = scmp.ne.s32.totalorder %s1522_s12, %s1518_s11  ;;  %p242_p4 = scmp.eq.s32.totalorder %s1163_s15, 1 }
   0xb   : > { %s1619_s19 = scalar_select %p223_p1, %s1526_s13, %s225_s17  }
   0xc   : > { %p1621_p5 = por %p236_p2, %p235_p0  ;;  %p1625_p6 = por %p242_p4, %p241_p3 }
   0xd   : > { %p1166_p7 = scmp.ge.s32.totalorder %s1530_s14, 1  ;;  %p293_p8 = scmp.lt.s32.totalorder %s1530_s14, 3 }
   0xf   : > { %p294_p9 = pnand %p1166_p7, %p293_p8 }
  0x10   : > { %v350_v1 = vld [vmem:[%s1864_s1] sm:$0xff] (!%p294_p9)  ;;  %v351_v2 = vld [vmem:[%s1864_s1 + $0x8] sm:$0xff] (!%p294_p9)  ;;  %v352_v3 = vld [vmem:[%s1864_s1 + $0x10] sm:$0xff] (!%p294_p9)  ;;  %s1640_s28 = sshll.u32 (!%p294_p9), %s1162_s8, 4  ;;  %vm361_vm0 = vcmask (!%p294_p9), 261120   ;;  %vm774_vm1 = vcmask (!%p294_p9), 523264  }
  0x11   : > { %297 = sbr.rel (%p294_p9) target bundleno = 970 (0x3ca), region = 56  ;;  %v1393_v4 = vpack.c.bf16 (!%p294_p9), %v351_v2, %v350_v1  ;;  %v353_v5 = vld [vmem:[%s1864_s1 + $0x18] sm:$0xff] (!%p294_p9)  ;;  %p329_p10 = scmp.lt.s32.totalorder (!%p294_p9), %s1640_s28, 31  ;;  %v555_v7 = vld [vmem:[%s1866_s3] sm:$0xff] (!%p294_p9)  ;;  %v556_v8 = vld [vmem:[%s1866_s3 + $0x8] sm:$0xff] (!%p294_p9) }
  0x12   : > { %v1397_v6 = vpack.c.bf16 (!%p294_p9), %v353_v5, %v352_v3  ;;  %v1401_v9 = vpack.c.bf16 (!%p294_p9), %v556_v8, %v555_v7  ;;  %v557_v11 = vld [vmem:[%s1866_s3 + $0x10] sm:$0xff] (!%p294_p9)  ;;  %v558_v12 = vld [vmem:[%s1866_s3 + $0x18] sm:$0xff] (!%p294_p9)  ;;  %v759_v29 = vld [vmem:[%s1868_s5] sm:$0xff] (!%p294_p9)  ;;  %s326_s29 = sand.u32 (!%p294_p9), 1, %s1522_s12   ;;  %s1823_s18 = scalar_lea.hbm (!%p294_p9), %s1872_s9, %s1640_s28 }
  0x13   : > { %1394 = vmatprep.subr.bf16.mxu0 (!%p294_p9), %v1393_v4  ;;  %1425 = vmatprep.subr.bf16.mxu1 (!%p294_p9), %v1393_v4  ;;  %v1405_v18 = vpack.c.bf16 (!%p294_p9), %v558_v12, %v557_v11  ;;  %v760_v30 = vld [vmem:[%s1868_s5 + $0x8] sm:$0xff] (!%p294_p9)  ;;  %v761_v31 = vld [vmem:[%s1868_s5 + $0x10] sm:$0xff] (!%p294_p9)  ;;  %v762_v33 = vld [vmem:[%s1868_s5 + $0x18] sm:$0xff] (!%p294_p9)  ;;  %s327_s30 = scalar_lea.vmem (!%p294_p9), [#allocation3], %s326_s29  ;;  %s1096_s22 = scalar_lea.sflag (!%p294_p9), [#allocation4], %s326_s29 }
  0x14   : > { %1396 = vmatpush3.bf16.msra.mxu0 (!%p294_p9), %v1393_v4  ;;  %1427 = vmatpush3.bf16.msra.mxu1 (!%p294_p9), %v1393_v4  ;;  %v1409_v32 = vpack.c.bf16 (!%p294_p9), %v760_v30, %v759_v29  ;;  %v1413_v34 = vpack.c.bf16 (!%p294_p9), %v762_v33, %v761_v31  ;;  %v763_v35 = vld [vmem:[%s1868_s5 + $0x20] sm:$0xff] (!%p294_p9)  ;;  %v764_v36 = vld [vmem:[%s1868_s5 + $0x28] sm:$0xff] (!%p294_p9)  ;;  %v765_v7 = vld [vmem:[%s1868_s5 + $0x30] sm:$0xff] (!%p294_p9)  ;;  %s1532_s23 = smov (!%p294_p9), [#allocation3]  }
  0x15   : > { %1398 = vmatprep.subr.bf16.mxu0 (!%p294_p9), %v1397_v6  ;;  %1426 = vmatprep.subr.bf16.mxu1 (!%p294_p9), %v1397_v6  ;;  %v1417_v37 = vpack.c.bf16 (!%p294_p9), %v764_v36, %v763_v35  ;;  %v1169_v38 = vld [vmem:[%s1865_s2] ss:$0 sm:$0xff] (!%p294_p9)  ;;  %v766_v8 = vld [vmem:[%s1868_s5 + $0x38] sm:$0xff] (!%p294_p9)  ;;  %s1472_s24 = sshll.u32 (!%p294_p9), %s1532_s23, 4  ;;  %s1473_s24 = int_to_ptr.vmem [resolvable:$false] %s1472_s24 }
  0x18   : > { %s330_s10 = scalar_select %p329_p10, %s1640_s28, 31  ;;  %1400 = vmatpush3.bf16.msra.mxu0 %v1397_v6  ;;  %1428 = vmatpush3.bf16.msra.mxu1 %v1397_v6 }
  0x19   : > { %1402 = vmatprep.subr.bf16.mxu1 %v1401_v9  ;;  %1410 = vmatprep.subr.bf16.mxu0 %v1409_v32 }
  0x1a   : > { %s1168_s8 = sshll.u32 %s330_s10, 3  ;;  %s1108_s10 = sshll.u32 %s327_s30, 4  ;;  %s1817_s10 = int_to_ptr.vmem [resolvable:$true] %s1108_s10 }
  0x1b   : > { %s1656_s25 = scalar_lea.vmem %s1863_s0, %s1168_s8  ;;  %s1468_s8 = scalar_lea.vmem %s1817_s10, 16 }
  0x1c   : > { %v334_v10 = vld [vmem:[%s1656_s25] sm:$0xff]  ;;  %v335_v13 = vld [vmem:[%s1656_s25 + $0x8] sm:$0xff]  ;;  %v336_v14 = vld [vmem:[%s1656_s25 + $0x10] sm:$0xff]  ;;  %p1469_p11 = scmp.ne.s32.totalorder %s1817_s10, %s1468_s8  ;;  %p1475_p0 = scmp.lt.s32.totalorder %s1817_s10, %s1473_s24 }
  0x1d   : > { %1297 = vmatprep.mubr.msk.f32.mxu0 %vm361_vm0, %v334_v10  ;;  %v342_v15 = vld [vmem:[%s1656_s25 + $0x40] sm:$0xff]  ;;  %v343_v16 = vld [vmem:[%s1656_s25 + $0x48] sm:$0xff]  ;;  %v344_v17 = vld [vmem:[%s1656_s25 + $0x50] sm:$0xff] }
  0x1e   : > { %1309 = vmatprep.mubr.msk.f32.mxu1 %vm361_vm0, %v342_v15  ;;  %1298 = vmatmul.mubr.msk.f32.vlgmr.msra.gmra.mrb[0].mxu0 %vm361_vm0, %v335_v13  ;;  %v337_v19 = vld [vmem:[%s1656_s25 + $0x18] sm:$0xff]  ;;  %v338_v20 = vld [vmem:[%s1656_s25 + $0x20] sm:$0xff]  ;;  %v339_v23 = vld [vmem:[%s1656_s25 + $0x28] sm:$0xff]  ;;  %p1470_p12 = pnand %p1469_p11, %p1621_p5 }
  0x1f   : > { %1300 = vmatprep.mubr.msk.f32.mxu0 %vm361_vm0, %v336_v14  ;;  %1310 = vmatmul.mubr.msk.f32.vlgmr.msra.gmra.mrb[0].mxu1 %vm361_vm0, %v343_v16  ;;  %v345_v21 = vld [vmem:[%s1656_s25 + $0x58] sm:$0xff]  ;;  %v346_v22 = vld [vmem:[%s1656_s25 + $0x60] sm:$0xff]  ;;  %v340_v24 = vld [vmem:[%s1656_s25 + $0x30] sm:$0xff] }
  0x20   : > { %1312 = vmatprep.mubr.msk.f32.mxu1 %vm361_vm0, %v344_v17  ;;  %1404 = vmatpush3.bf16.msra.mxu1 %v1401_v9  ;;  %v347_v25 = vld [vmem:[%s1656_s25 + $0x68] sm:$0xff]  ;;  %v348_v26 = vld [vmem:[%s1656_s25 + $0x70] sm:$0xff]  ;;  %v341_v27 = vld [vmem:[%s1656_s25 + $0x38] sm:$0xff]  ;;  %v1421_v9 = vpack.c.bf16 %v766_v8, %v765_v7  ;;  %p1471_p13 = pneg %p1470_p12 }
  0x21   : > { %1406 = vmatprep.subr.bf16.mxu1 %v1405_v18  ;;  %v349_v28 = vld [vmem:[%s1656_s25 + $0x78] sm:$0xff]  ;;  %1412 = vmatpush3.bf16.msra.mxu0 %v1409_v32  ;;  %v1186_v10 = vld [vmem:[%s1867_s4] ss:$0 sm:$0xff]  ;;  %s1474_s25 = scalar_lea.vmem %s1473_s24, 32 }
  0x22   : > { %1301 = vmatmul.mubr.msk.f32.gmra.mrb[2].mxu0 %vm361_vm0, %v337_v19  ;;  %1414 = vmatprep.subr.bf16.mxu0 %v1413_v34  ;;  %p1476_p1 = scmp.lt.s32.totalorder %s1474_s25, %s1468_s8 }
  0x23   : > { %1303 = vmatprep.mubr.msk.f32.mxu0 %vm361_vm0, %v338_v20  ;;  %1313 = vmatmul.mubr.msk.f32.gmra.mrb[2].mxu1 %vm361_vm0, %v345_v21 }
  0x24   : > { %1315 = vmatprep.mubr.msk.f32.mxu1 %vm361_vm0, %v346_v22  ;;  %1408 = vmatpush3.bf16.msra.mxu1 %v1405_v18  ;;  %p1477_p2 = por %p1476_p1, %p1475_p0 }
  0x25   : > { %1416 = vmatpush3.bf16.msra.mxu0 %v1413_v34 }
  0x26   : > { %1304 = vmatmul.mubr.msk.f32.gmra.mrb[4].mxu0 %vm361_vm0, %v339_v23  ;;  %1418 = vmatprep.subr.bf16.mxu0 %v1417_v37  ;;  %p1478_p3 = pnand %p1477_p2, %p1471_p13 }
  0x27   : > { %1306 = vmatprep.mubr.msk.f32.mxu0 %vm361_vm0, %v340_v24  ;;  %1316 = vmatmul.mubr.msk.f32.gmra.mrb[4].mxu1 %vm361_vm0, %v347_v25 }
  0x28   : > { %1318 = vmatprep.mubr.msk.f32.mxu1 %vm361_vm0, %v348_v26 }
  0x29   : > { %1420 = vmatpush3.bf16.msra.mxu0 %v1417_v37 }
  0x2a   : > { %1307 = vmatmul.mubr.msk.f32.gmra.mrb[6].mxu0 %vm361_vm0, %v341_v27  ;;  %1422 = vmatprep.subr.bf16.mxu0 %v1421_v9 }
  0x2b   : > { %1319 = vmatmul.mubr.msk.f32.gmra.mrb[6].mxu1 %vm361_vm0, %v349_v28 }
  0x2d   : > { %1424 = vmatpush3.bf16.msra.mxu0 %v1421_v9 }
  0xf1   : > { %v1299_v39 = vpop.f32.mrb[0].mxu0 }
  0xf2   : > { %v476_v40 = vpop.f32.mrb[1].mxu0  ;;  %v1311_v41 = vpop.f32.mrb[0].mxu1  ;;  %v482_v44 = vadd.f32 %v1299_v39, %v1169_v38 }
  0xf3   : > { %v477_v42 = vadd.f32 %v1169_v38, %v476_v40  ;;  %v516_v43 = vpop.f32.mrb[1].mxu1  ;;  %v522_v0 = vadd.f32 %v1311_v41, %v1169_v38 }
  0xf4   : > { %v517_v62 = vadd.f32 %v1169_v38, %v516_v43  ;;  %v1761_v43 = vld [vmem:[%s1869_s6] ss:$0 sm:$0xff] }
  0xf5   : > { %v1302_v45 = vpop.f32.mrb[2].mxu0  ;;  %1329 = vmatprep.mubr.msk.f32.mxu1 %vm361_vm0, %v477_v42 }
  0xf6   : > { %v492_v46 = vadd.f32 %v1302_v45, %v1169_v38  ;;  %v486_v47 = vpop.f32.mrb[3].mxu0  ;;  %1330 = vmatmul.mubr.msk.f32.vlgmr.msra.gmra.mrb[8].mxu1 %vm361_vm0, %v482_v44  ;;  %v1314_v48 = vpop.f32.mrb[2].mxu1  ;;  %v1766_v45 = vld [vmem:[%s1870_s7] ss:$0 sm:$0xff] }
  0xf7   : > { %v487_v49 = vadd.f32 %v1169_v38, %v486_v47  ;;  %v526_v50 = vpop.f32.mrb[3].mxu1  ;;  %v532_v2 = vadd.f32 %v1314_v48, %v1169_v38 }
  0xf8   : > { %v527_v1 = vadd.f32 %v1169_v38, %v526_v50 }
  0xf9   : > { %1332 = vmatprep.mubr.msk.f32.mxu1 %vm361_vm0, %v487_v49  ;;  %v1305_v51 = vpop.f32.mrb[4].mxu0 }
  0xfa   : > { %1333 = vmatmul.mubr.msk.f32.gmra.mrb[10].mxu1 %vm361_vm0, %v492_v46  ;;  %v502_v52 = vadd.f32 %v1305_v51, %v1169_v38  ;;  %v496_v53 = vpop.f32.mrb[5].mxu0  ;;  %v1317_v54 = vpop.f32.mrb[4].mxu1 }
  0xfb   : > { %v497_v55 = vadd.f32 %v1169_v38, %v496_v53  ;;  %v536_v56 = vpop.f32.mrb[5].mxu1  ;;  %v542_v4 = vadd.f32 %v1317_v54, %v1169_v38 }
  0xfc   : > { %v537_v3 = vadd.f32 %v1169_v38, %v536_v56 }
  0xfd   : > { %1335 = vmatprep.mubr.msk.f32.mxu1 %vm361_vm0, %v497_v55  ;;  %v1308_v57 = vpop.f32.mrb[6].mxu0 }
  0xfe   : > { %1336 = vmatmul.mubr.msk.f32.gmra.mrb[12].mxu1 %vm361_vm0, %v502_v52  ;;  %v512_v58 = vadd.f32 %v1308_v57, %v1169_v38  ;;  %v506_v59 = vpop.f32.mrb[7].mxu0  ;;  %v1320_v60 = vpop.f32.mrb[6].mxu1 }
  0xff   : > { %v507_v61 = vadd.f32 %v1169_v38, %v506_v59  ;;  %v546_v63 = vpop.f32.mrb[7].mxu1  ;;  %v552_v6 = vadd.f32 %v1320_v60, %v1169_v38 }
 0x100   : > { %v547_v5 = vadd.f32 %v1169_v38, %v546_v63 }
 0x101   : > { %1338 = vmatprep.mubr.msk.f32.mxu1 %vm361_vm0, %v507_v61 }
 0x102   : > { %1339 = vmatmul.mubr.msk.f32.gmra.mrb[14].mxu1 %vm361_vm0, %v512_v58 }
 0x103   : > { %1341 = vmatprep.mubr.msk.f32.mxu1 %vm361_vm0, %v517_v62 }
 0x106   : > { %1342 = vmatmul.mubr.msk.f32.gmra.mrb[16].mxu1 %vm361_vm0, %v522_v0 }
 0x107   : > { %1344 = vmatprep.mubr.msk.f32.mxu1 %vm361_vm0, %v527_v1 }
 0x10a   : > { %1345 = vmatmul.mubr.msk.f32.gmra.mrb[18].mxu1 %vm361_vm0, %v532_v2 }
 0x10b   : > { %1347 = vmatprep.mubr.msk.f32.mxu1 %vm361_vm0, %v537_v3 }
 0x10e   : > { %1348 = vmatmul.mubr.msk.f32.gmra.mrb[20].mxu1 %vm361_vm0, %v542_v4 }
 0x10f   : > { %1350 = vmatprep.mubr.msk.f32.mxu1 %vm361_vm0, %v547_v5 }
 0x112   : > { %1351 = vmatmul.mubr.msk.f32.gmra.mrb[22].mxu1 %vm361_vm0, %v552_v6 }
 0x1c9   : > { %v1331_v11 = vpop.f32.mrb[8].mxu1 }
 0x1ca   : > { %v680_v12 = vpop.f32.mrb[9].mxu1  ;;  %v686_v14 = vadd.f32 %v1331_v11, %v1186_v10 }
 0x1cb   : > { %v681_v13 = vadd.f32 %v1186_v10, %v680_v12 }
 0x1cd   : > { %v1334_v15 = vpop.f32.mrb[10].mxu1  ;;  %1369 = vmatprep.mubr.msk.f32.mxu0 %vm774_vm1, %v681_v13 }
 0x1ce   : > { %v696_v16 = vadd.f32 %v1334_v15, %v1186_v10  ;;  %v690_v17 = vpop.f32.mrb[11].mxu1  ;;  %1370 = vmatmul.mubr.msk.f32.vlgmr.msra.gmra.mrb[8].mxu0 %vm774_vm1, %v686_v14 }
 0x1cf   : > { %v691_v18 = vadd.f32 %v1186_v10, %v690_v17 }
 0x1d1   : > { %1372 = vmatprep.mubr.msk.f32.mxu0 %vm774_vm1, %v691_v18  ;;  %v1337_v19 = vpop.f32.mrb[12].mxu1 }
 0x1d2   : > { %1373 = vmatmul.mubr.msk.f32.gmra.mrb[10].mxu0 %vm774_vm1, %v696_v16  ;;  %v706_v20 = vadd.f32 %v1337_v19, %v1186_v10  ;;  %v700_v21 = vpop.f32.mrb[13].mxu1 }
 0x1d3   : > { %v701_v22 = vadd.f32 %v1186_v10, %v700_v21 }
 0x1d5   : > { %1375 = vmatprep.mubr.msk.f32.mxu0 %vm774_vm1, %v701_v22  ;;  %v1340_v23 = vpop.f32.mrb[14].mxu1 }
 0x1d6   : > { %1376 = vmatmul.mubr.msk.f32.gmra.mrb[12].mxu0 %vm774_vm1, %v706_v20  ;;  %v716_v24 = vadd.f32 %v1340_v23, %v1186_v10  ;;  %v710_v25 = vpop.f32.mrb[15].mxu1 }
 0x1d7   : > { %v711_v26 = vadd.f32 %v1186_v10, %v710_v25 }
 0x1d9   : > { %1378 = vmatprep.mubr.msk.f32.mxu0 %vm774_vm1, %v711_v26  ;;  %v1343_v27 = vpop.f32.mrb[16].mxu1 }
 0x1da   : > { %1379 = vmatmul.mubr.msk.f32.gmra.mrb[14].mxu0 %vm774_vm1, %v716_v24  ;;  %v726_v28 = vadd.f32 %v1343_v27, %v1186_v10  ;;  %v720_v29 = vpop.f32.mrb[17].mxu1 }
 0x1db   : > { %v721_v30 = vadd.f32 %v1186_v10, %v720_v29 }
 0x1dd   : > { %1381 = vmatprep.mubr.msk.f32.mxu0 %vm774_vm1, %v721_v30  ;;  %v1346_v31 = vpop.f32.mrb[18].mxu1 }
 0x1de   : > { %1382 = vmatmul.mubr.msk.f32.gmra.mrb[16].mxu0 %vm774_vm1, %v726_v28  ;;  %v736_v32 = vadd.f32 %v1346_v31, %v1186_v10  ;;  %v730_v33 = vpop.f32.mrb[19].mxu1 }
 0x1df   : > { %v731_v34 = vadd.f32 %v1186_v10, %v730_v33 }
 0x1e1   : > { %1384 = vmatprep.mubr.msk.f32.mxu0 %vm774_vm1, %v731_v34  ;;  %v1349_v35 = vpop.f32.mrb[20].mxu1 }
 0x1e2   : > { %1385 = vmatmul.mubr.msk.f32.gmra.mrb[18].mxu0 %vm774_vm1, %v736_v32  ;;  %v746_v36 = vadd.f32 %v1349_v35, %v1186_v10  ;;  %v740_v37 = vpop.f32.mrb[21].mxu1 }
 0x1e3   : > { %v741_v38 = vadd.f32 %v1186_v10, %v740_v37 }
 0x1e5   : > { %1387 = vmatprep.mubr.msk.f32.mxu0 %vm774_vm1, %v741_v38  ;;  %v1352_v39 = vpop.f32.mrb[22].mxu1 }
 0x1e6   : > { %1388 = vmatmul.mubr.msk.f32.gmra.mrb[20].mxu0 %vm774_vm1, %v746_v36  ;;  %v756_v40 = vadd.f32 %v1352_v39, %v1186_v10  ;;  %v750_v41 = vpop.f32.mrb[23].mxu1 }
 0x1e7   : > { %v751_v42 = vadd.f32 %v1186_v10, %v750_v41 }
 0x1e9   : > { %1390 = vmatprep.mubr.msk.f32.mxu0 %vm774_vm1, %v751_v42 }
 0x1ea   : > { %1391 = vmatmul.mubr.msk.f32.gmra.mrb[22].mxu0 %vm774_vm1, %v756_v40 }
 0x2a1   : > { %v1371_v44 = vpop.f32.mrb[8].mxu0 }
 0x2a2   : > { %v895_v46 = vadd.f32 %v1371_v44, %v1761_v43  ;;  %v889_v47 = vpop.f32.mrb[9].mxu0 }
 0x2a3   : > { %v890_v48 = vadd.f32 %v1761_v43, %v889_v47 }
 0x2a4   : > { %v976_v49 = vmul.f32 %v1766_v45, %v895_v46 }
 0x2a5   : > { %v1374_v50 = vpop.f32.mrb[10].mxu0  ;;  %v975_v53 = vmul.f32 %v1766_v45, %v890_v48  ;;  %v1221_v48 = vld [vmem:[#allocation2] ss:$0 sm:$0xff] }
 0x2a6   : > { %v899_v51 = vpop.f32.mrb[11].mxu0  ;;  %v994_v52 = vsel %vm361_vm0, %v976_v49, 0.0  ;;  %v905_v54 = vadd.f32 %v1374_v50, %v1761_v43 }
 0x2a7   : > { %v900_v55 = vadd.f32 %v1761_v43, %v899_v51  ;;  %995 = vadd.xlane.f32.xlu0 %v994_v52  ;;  %v991_v58 = vsel %vm361_vm0, %v975_v53, 0.0 }
 0x2a8   : > { %v978_v63 = vmul.f32 %v1766_v45, %v905_v54 }
 0x2a9   : > { %v977_v56 = vmul.f32 %v1766_v45, %v900_v55  ;;  %v1377_v57 = vpop.f32.mrb[12].mxu0 }
 0x2aa   : > { %v915_v59 = vadd.f32 %v1377_v57, %v1761_v43  ;;  %v909_v60 = vpop.f32.mrb[13].mxu0  ;;  %v1000_v5 = vsel %vm361_vm0, %v978_v63, 0.0 }
 0x2ab   : > { %992 = vadd.xlane.f32.xlu0 %v991_v58  ;;  %v997_v61 = vsel %vm361_vm0, %v977_v56, 0.0  ;;  %v910_v62 = vadd.f32 %v1761_v43, %v909_v60 }
 0x2ac   : > { %998 = vadd.xlane.f32.xlu1 %v997_v61  ;;  %v980_v0 = vmul.f32 %v1766_v45, %v915_v59 }
 0x2ad   : > { %v979_v1 = vmul.f32 %v1766_v45, %v910_v62  ;;  %v1380_v2 = vpop.f32.mrb[14].mxu0 }
 0x2ae   : > { %v925_v3 = vadd.f32 %v1380_v2, %v1761_v43  ;;  %v919_v4 = vpop.f32.mrb[15].mxu0  ;;  %v1006_v8 = vsel %vm361_vm0, %v980_v0, 0.0 }
 0x2af   : > { %v1003_v6 = vsel %vm361_vm0, %v979_v1, 0.0  ;;  %v920_v7 = vadd.f32 %v1761_v43, %v919_v4 }
 0x2b0   : > { %1001 = vadd.xlane.f32.xlu1 %v1000_v5  ;;  %1004 = vadd.xlane.f32.xlu0 %v1003_v6  ;;  %v982_v9 = vmul.f32 %v1766_v45, %v925_v3 }
 0x2b1   : > { %v981_v10 = vmul.f32 %v1766_v45, %v920_v7  ;;  %v1383_v11 = vpop.f32.mrb[16].mxu0 }
 0x2b2   : > { %v935_v12 = vadd.f32 %v1383_v11, %v1761_v43  ;;  %v929_v13 = vpop.f32.mrb[17].mxu0  ;;  %v1012_v16 = vsel %vm361_vm0, %v982_v9, 0.0 }
 0x2b3   : > { %v1009_v14 = vsel %vm361_vm0, %v981_v10, 0.0  ;;  %v930_v15 = vadd.f32 %v1761_v43, %v929_v13 }
 0x2b4   : > { %1007 = vadd.xlane.f32.xlu1 %v1006_v8  ;;  %1010 = vadd.xlane.f32.xlu0 %v1009_v14  ;;  %v984_v17 = vmul.f32 %v1766_v45, %v935_v12 }
 0x2b5   : > { %v983_v18 = vmul.f32 %v1766_v45, %v930_v15  ;;  %v1386_v19 = vpop.f32.mrb[18].mxu0 }
 0x2b6   : > { %v945_v20 = vadd.f32 %v1386_v19, %v1761_v43  ;;  %v939_v21 = vpop.f32.mrb[19].mxu0  ;;  %v1018_v24 = vsel %vm361_vm0, %v984_v17, 0.0 }
 0x2b7   : > { %v1015_v22 = vsel %vm361_vm0, %v983_v18, 0.0  ;;  %v940_v23 = vadd.f32 %v1761_v43, %v939_v21 }
 0x2b8   : > { %1013 = vadd.xlane.f32.xlu1 %v1012_v16  ;;  %1016 = vadd.xlane.f32.xlu0 %v1015_v22  ;;  %v986_v25 = vmul.f32 %v1766_v45, %v945_v20 }
 0x2b9   : > { %v985_v26 = vmul.f32 %v1766_v45, %v940_v23  ;;  %v1389_v27 = vpop.f32.mrb[20].mxu0 }
 0x2ba   : > { %v955_v28 = vadd.f32 %v1389_v27, %v1761_v43  ;;  %v949_v29 = vpop.f32.mrb[21].mxu0  ;;  %v1024_v32 = vsel %vm361_vm0, %v986_v25, 0.0 }
 0x2bb   : > { %v1021_v30 = vsel %vm361_vm0, %v985_v26, 0.0  ;;  %v950_v31 = vadd.f32 %v1761_v43, %v949_v29 }
 0x2bc   : > { %1019 = vadd.xlane.f32.xlu1 %v1018_v24  ;;  %1022 = vadd.xlane.f32.xlu0 %v1021_v30  ;;  %v988_v33 = vmul.f32 %v1766_v45, %v955_v28 }
 0x2bd   : > { %v987_v34 = vmul.f32 %v1766_v45, %v950_v31  ;;  %v1392_v35 = vpop.f32.mrb[22].mxu0 }
 0x2be   : > { %v965_v36 = vadd.f32 %v1392_v35, %v1761_v43  ;;  %v959_v37 = vpop.f32.mrb[23].mxu0  ;;  %v1030_v40 = vsel %vm361_vm0, %v988_v33, 0.0 }
 0x2bf   : > { %v1027_v38 = vsel %vm361_vm0, %v987_v34, 0.0  ;;  %v960_v39 = vadd.f32 %v1761_v43, %v959_v37 }
 0x2c0   : > { %1025 = vadd.xlane.f32.xlu1 %v1024_v32  ;;  %1028 = vadd.xlane.f32.xlu0 %v1027_v38  ;;  %v990_v41 = vmul.f32 %v1766_v45, %v965_v36 }
 0x2c1   : > { %v989_v42 = vmul.f32 %v1766_v45, %v960_v39 }
 0x2c2   : > { %v1036_v46 = vsel %vm361_vm0, %v990_v41, 0.0 }
 0x2c3   : > { %v1033_v44 = vsel %vm361_vm0, %v989_v42, 0.0 }
 0x2c4   : > { %1031 = vadd.xlane.f32.xlu1 %v1030_v40  ;;  %1034 = vadd.xlane.f32.xlu0 %v1033_v44 }
 0x2c8   : > { %1037 = vadd.xlane.f32.xlu1 %v1036_v46 }
 0x334   : > { %v996_v47 = vpop.xlane.xlu0 %995 }
 0x335   : > { %v1047_v51 = vadd.f32 %v1221_v48, %v996_v47 }
 0x338   : > { %v993_v49 = vpop.xlane.xlu0 %992 }
 0x339   : > { %v1046_v50 = vadd.f32 %v1221_v48, %v993_v49  ;;  %v999_v43 = vpop.xlane.xlu1 %998 }
 0x33a   : > { %v1048_v52 = vadd.f32 %v1221_v48, %v999_v43 }
 0x33b   : > { %1062 = vxpose.xlu0.b32.start [1/16] (narrow) %v1046_v50, 8 }
 0x33d   : > { %v1002_v53 = vpop.xlane.xlu1 %1001  ;;  %v1005_v45 = vpop.xlane.xlu0 %1004 }
 0x33e   : > { %v1049_v54 = vadd.f32 %v1221_v48, %v1002_v53  ;;  %v1050_v55 = vadd.f32 %v1221_v48, %v1005_v45 }
 0x33f   : > { %1063 = vxpose.xlu0.b32.cont [2/16] (narrow) %v1047_v51, 8 }
 0x341   : > { %v1008_v56 = vpop.xlane.xlu1 %1007  ;;  %v1011_v58 = vpop.xlane.xlu0 %1010 }
 0x342   : > { %v1051_v57 = vadd.f32 %v1221_v48, %v1008_v56  ;;  %v1052_v59 = vadd.f32 %v1221_v48, %v1011_v58 }
 0x343   : > { %1064 = vxpose.xlu0.b32.cont [3/16] (narrow) %v1048_v52, 8 }
 0x345   : > { %v1014_v60 = vpop.xlane.xlu1 %1013  ;;  %v1017_v62 = vpop.xlane.xlu0 %1016 }
 0x346   : > { %v1053_v61 = vadd.f32 %v1221_v48, %v1014_v60  ;;  %v1054_v63 = vadd.f32 %v1221_v48, %v1017_v62 }
 0x347   : > { %1065 = vxpose.xlu0.b32.cont [4/16] (narrow) %v1049_v54, 8 }
 0x349   : > { %v1020_v0 = vpop.xlane.xlu1 %1019  ;;  %v1023_v2 = vpop.xlane.xlu0 %1022 }
 0x34a   : > { %v1055_v1 = vadd.f32 %v1221_v48, %v1020_v0  ;;  %v1056_v3 = vadd.f32 %v1221_v48, %v1023_v2 }
 0x34b   : > { %1066 = vxpose.xlu0.b32.cont [5/16] (narrow) %v1050_v55, 8 }
 0x34d   : > { %v1026_v4 = vpop.xlane.xlu1 %1025  ;;  %v1029_v6 = vpop.xlane.xlu0 %1028 }
 0x34e   : > { %v1057_v5 = vadd.f32 %v1221_v48, %v1026_v4  ;;  %v1058_v7 = vadd.f32 %v1221_v48, %v1029_v6 }
 0x34f   : > { %1067 = vxpose.xlu0.b32.cont [6/16] (narrow) %v1051_v57, 8 }
 0x351   : > { %v1032_v8 = vpop.xlane.xlu1 %1031  ;;  %v1035_v10 = vpop.xlane.xlu0 %1034 }
 0x352   : > { %v1059_v9 = vadd.f32 %v1221_v48, %v1032_v8  ;;  %v1060_v11 = vadd.f32 %v1221_v48, %v1035_v10 }
 0x353   : > { %1068 = vxpose.xlu0.b32.cont [7/16] (narrow) %v1052_v59, 8 }
 0x355   : > { %v1038_v12 = vpop.xlane.xlu1 %1037 }
 0x356   : > { %v1061_v13 = vadd.f32 %v1221_v48, %v1038_v12 }
 0x357   : > { %1069 = vxpose.xlu0.b32.cont [8/16] (narrow) %v1053_v61, 8 }
 0x35b   : > { %1070 = vxpose.xlu0.b32.cont [9/16] (narrow) %v1054_v63, 8 }
 0x35f   : > { %1071 = vxpose.xlu0.b32.cont [10/16] (narrow) %v1055_v1, 8 }
 0x363   : > { %1072 = vxpose.xlu0.b32.cont [11/16] (narrow) %v1056_v3, 8 }
 0x367   : > { %1073 = vxpose.xlu0.b32.cont [12/16] (narrow) %v1057_v5, 8 }
 0x36b   : > { %1074 = vxpose.xlu0.b32.cont [13/16] (narrow) %v1058_v7, 8 }
 0x36f   : > { %1075 = vxpose.xlu0.b32.cont [14/16] (narrow) %v1059_v9, 8 }
 0x373   : > { %1076 = vxpose.xlu0.b32.cont [15/16] (narrow) %v1060_v11, 8 }
 0x377   : > { %1077 = vxpose.xlu0.b32.end [16/16] (narrow) %v1061_v13, 8 }
 0x3bb   : > { %v1078_v14 = vpop.trf.xlu0 }
 0x3bc   : > { %1094 = vst [vmem:[%s327_s30] sm:$0x1] %v1078_v14 }
 0x3bd   : > { %1481 = shalt.err (!%p1478_p3)
}
 0x3be   : > { %s1482_s28 = scalar_lea.hbm %s1823_s18, 16  ;;  %s1486_s29 = scalar_lea.hbm %s1872_s9, 32 }
 0x3bf   : > { %p1483_p4 = scmp.ne.s32.totalorder %s1823_s18, %s1482_s28  ;;  %p1487_p9 = scmp.lt.u32.totalorder %s1823_s18, %s1872_s9 }
 0x3c0   : > { %p1488_p10 = scmp.lt.u32.totalorder %s1486_s29, %s1482_s28  ;;  %p1490_p12 = scmp.lt.u32.totalorder %s1482_s28, %s1823_s18 }
 0x3c1   : > { %p1484_p7 = pnand %p1483_p4, %p1621_p5 }
 0x3c2   : > { %p1489_p11 = por %p1488_p10, %p1487_p9 }
 0x3c3   : > { %p1485_p8 = pneg %p1484_p7 }
 0x3c4   : > { %p1491_p13 = por %p1490_p12, %p1489_p11 }
 0x3c6   : > { %p1492_p0 = pnand %p1491_p13, %p1485_p8 }
 0x3c8   : > { %1495 = shalt.err (!%p1492_p0)
}
 0x3c9   : > { %1429 = dma.vmem_to_hbm [thread:$0]  (%p1621_p5), %s1817_s10, 16, %s1823_s18, %s1096_s22  }
 0x3ca PF: > { %p1435_p1 = scmp.ge.s32.totalorder %s1530_s14, 2  ;;  %s1120_s17 = sand.u32 1, %s1518_s11  }
 0x3cb   : > { %s1121_s8 = scalar_lea.sflag [#allocation4], %s1120_s17 }
 0x3cc   : > { %p1432_p2 = pnand %p1435_p1, %p1625_p6 }
 0x3ce   : > { %1513 = dma.done.wait (!%p1432_p2), %s1121_s8, 16  }
 0x3cf   : > { %1515 = vsyncadd (!%p1432_p2), %s1121_s8, 4294967280  ;;  %p21_p3 = scmp.ge.s32.totalorder %s1609_s16, 4   ;;  %s1875_s11 = smov %s1522_s12 }
 0x3d0   : > { %s1876_s12 = smov %s1526_s13  ;;  %s1877_s13 = smov %s1619_s19 }
 0x3d1   : > { %s1878_s14 = smov %s1609_s16  ;;  %23 = sbr.rel (!%p21_p3) target bundleno = 6 (0x6), region = 91 }
 0x3d8   :  { %1125 = vsyncpa [#allocation4], 1 }
 0x3d9   :  { %1127 = vsyncpa [#allocation4 + $0x1], 1 }

</bundles_post_ra>
